<compile_context>
chip_gen: v7x
topology: tpu7x:2x2x1
jax: 0.10.0
libtpu: 0.0.40
codegen_flags: <defaults>
</compile_context>

<pallas_src>
import jax
import jax.numpy as jnp
from jax import lax
from jax.experimental import pallas as pl
from jax.experimental.pallas import tpu as pltpu


def attention_kernel(x_ref, wqkv_ref, wout_ref, bout_ref, o_ref):
    # x_ref:    (bb, n, dim)            bf16
    # wqkv_ref: (heads, dim, 3*dh)      bf16  (per-head fused [q|k|v] columns,
    #                                          softmax scale folded into q)
    # wout_ref: (heads, dh, dim)        bf16
    # bout_ref: (1, dim)                f32
    # o_ref:    (bb, n, dim)
    bb, n, dim = x_ref.shape
    heads, _, three_dh = wqkv_ref.shape
    dh = three_dh // 3
    M = bb * n

    # Flatten the batch block into the M dimension for the projection matmuls
    # (leading-dim collapse only; n == 8 keeps it sublane-tile aligned).
    xf = x_ref[...].reshape(M, dim)                               # (M, dim) bf16

    # Bias folded into the accumulator init (saves one full (M, dim) VPU pass).
    acc0 = jnp.broadcast_to(bout_ref[...].astype(jnp.float32), (M, dim))

    def head_body(h, acc):
        # Fused per-head QKV projection: one MXU matmul with N = 3*dim_head,
        # bf16 operands, f32 accumulate.
        qkv = jnp.dot(xf, wqkv_ref[h],
                      preferred_element_type=jnp.float32)         # (M, 3*dh) f32
        qh = qkv[:, 0 * dh:1 * dh].astype(jnp.bfloat16).reshape(bb, n, dh)
        kh = qkv[:, 1 * dh:2 * dh].astype(jnp.bfloat16).reshape(bb, n, dh)
        vh = qkv[:, 2 * dh:3 * dh].astype(jnp.bfloat16).reshape(bb, n, dh)

        # Scores: q @ k^T per batch element (contract dh, batch over bb) --
        # no materialized transpose; scale already folded into q's weights.
        dots = lax.dot_general(qh, kh, (((2,), (2,)), ((0,), (0,))),
                               preferred_element_type=jnp.float32)  # (bb, n, n)

        # Numerically stable softmax in f32; normalization deferred past PV.
        m = jnp.max(dots, axis=-1, keepdims=True)
        e = jnp.exp(dots - m)                                     # unnormalized probs
        l = jnp.sum(e, axis=-1, keepdims=True)                    # (bb, n, 1)

        # (unnormalized attn) @ v per batch (bf16 operands, f32 accumulate),
        # then normalize the (bb, n, dh) result with an EUP reciprocal instead
        # of dividing the (n, n) matrix.
        o3 = lax.dot_general(e.astype(jnp.bfloat16), vh,
                             (((2,), (1,)), ((0,), (0,))),
                             preferred_element_type=jnp.float32)  # (bb, n, dh)
        o3 = o3 * pl.reciprocal(l, approx=True)

        # Fused output projection: accumulate this head's contribution
        # (replaces lane-axis concat + one big final matmul).
        contrib = jnp.dot(o3.reshape(M, dh).astype(jnp.bfloat16), wout_ref[h],
                          preferred_element_type=jnp.float32)     # (M, dim)
        return acc + contrib

    # fori_loop bounds per-head live ranges (vs. a static Python unroll);
    # fully unroll only for small head counts.
    acc = lax.fori_loop(0, heads, head_body, acc0, unroll=(heads <= 4))

    o_ref[...] = acc.reshape(bb, n, dim).astype(o_ref.dtype)


def _pick_batch_block(b, n, dim, itemsize, target_bytes=1 << 20):
    """~1 MiB x-blocks (fits comfortably in v7x's VMEM budget with double
    buffering) and >=2 grid steps whenever b > 1 (pipelining + v7x dual-TC)."""
    per_batch = max(n * dim * itemsize, 1)
    bb = max(1, min(b, target_bytes // per_batch))
    if bb >= b and b > 1:
        bb = b // 2
    while b % bb:
        bb -= 1
    return max(bb, 1)


def attention_forward(x, w_qkv, w_out, b_out, *, heads, dim_head,
                      batch_block=None):
    """x: (b, n, dim); w_qkv: (dim, 3*inner); w_out: (inner, dim); b_out: (1, dim)."""
    b, n, dim = x.shape
    inner = heads * dim_head
    assert w_qkv.shape == (dim, 3 * inner)
    assert w_out.shape == (inner, dim)
    scale = float(dim_head) ** -0.5

    # Host-side weight re-layout (tiny one-off XLA ops):
    #   to_qkv (dim, 3*inner) -> per-head fused (heads, dim, 3*dim_head) with
    #   column order [q_h | k_h | v_h] and the softmax scale folded into the Q
    #   columns; to_out -> (heads, dim_head, dim). All matmul operands are cast
    #   to bf16 (native MXU rate); accumulation stays f32 in-kernel.
    w3 = w_qkv.reshape(dim, 3, heads, dim_head)
    wq = w3[:, 0] * scale                                   # (dim, heads, dh)
    wk = w3[:, 1]
    wv = w3[:, 2]
    wqkv_h = jnp.stack([wq, wk, wv], axis=2)                # (dim, heads, 3, dh)
    wqkv_h = (wqkv_h.transpose(1, 0, 2, 3)
              .reshape(heads, dim, 3 * dim_head)
              .astype(jnp.bfloat16))
    wout_h = w_out.reshape(heads, dim_head, dim).astype(jnp.bfloat16)
    x_bf = x.astype(jnp.bfloat16)
    b_out_f32 = b_out.astype(jnp.float32)

    bb = (_pick_batch_block(b, n, dim, x_bf.dtype.itemsize)
          if batch_block is None else batch_block)
    assert b % bb == 0, "batch must be divisible by the batch block"
    grid = (b // bb,)

    return pl.pallas_call(
        attention_kernel,
        out_shape=jax.ShapeDtypeStruct((b, n, dim), x.dtype),
        grid_spec=pltpu.PrefetchScalarGridSpec(
            num_scalar_prefetch=0,
            grid=grid,
            in_specs=[
                pl.BlockSpec((bb, n, dim), lambda i: (i, 0, 0)),               # x block
                pl.BlockSpec((heads, dim, 3 * dim_head), lambda i: (0, 0, 0)), # fused qkv W
                pl.BlockSpec((heads, dim_head, dim), lambda i: (0, 0, 0)),     # out-proj W
                pl.BlockSpec((1, dim), lambda i: (0, 0)),                      # out bias
            ],
            out_specs=pl.BlockSpec((bb, n, dim), lambda i: (i, 0, 0)),
        ),
        compiler_params=pltpu.CompilerParams(
            dimension_semantics=("parallel",)),
    )(x_bf, wqkv_h, wout_h, b_out_f32)


def reference_forward(x, w_qkv, w_out, b_out, *, heads, dim_head):
    """Plain-JAX reference mirroring the PyTorch forward (mask=None), f32."""
    b, n, dim = x.shape
    inner = heads * dim_head
    scale = float(dim_head) ** -0.5
    qkv = x @ w_qkv
    q, k, v = jnp.split(qkv, 3, axis=-1)

    def split_heads(t):  # b n (h d) -> b h n d
        return t.reshape(b, n, heads, dim_head).transpose(0, 2, 1, 3)

    q, k, v = map(split_heads, (q, k, v))
    dots = jnp.einsum('bhid,bhjd->bhij', q, k) * scale
    attn = jax.nn.softmax(dots, axis=-1)
    out = jnp.einsum('bhij,bhjd->bhid', attn, v)
    out = out.transpose(0, 2, 1, 3).reshape(b, n, inner)
    return out @ w_out + b_out[0]


if __name__ == "__main__":
    # Small shapes consistent with the module's forward.
    batch, seq, dim = 2, 8, 32
    heads, dim_head = 4, 16
    inner = heads * dim_head

    key = jax.random.PRNGKey(0)
    kx, kq, ko, kb = jax.random.split(key, 4)

    x = jax.random.normal(kx, (batch, seq, dim), dtype=jnp.float32)
    # Synthetic parameters (module shapes: to_qkv (3*inner, dim),
    # to_out (dim, inner) + bias(dim)); stored pre-transposed for x @ W.
    w_qkv = jax.random.normal(kq, (dim, 3 * inner), dtype=jnp.float32) * 0.05
    w_out = jax.random.normal(ko, (inner, dim), dtype=jnp.float32) * 0.05
    b_out = (jax.random.normal(kb, (1, dim), dtype=jnp.float32) * 0.05)

    y = attention_forward(x, w_qkv, w_out, b_out,
                          heads=heads, dim_head=dim_head)
    jax.block_until_ready(y)

    y_ref = reference_forward(x, w_qkv, w_out, b_out,
                              heads=heads, dim_head=dim_head)
    # Relaxed tolerance: bf16 MXU operands (f32 accumulation) plus the EUP
    # approximate reciprocal on the softmax denominator.
    assert jnp.allclose(y, y_ref, atol=2e-2, rtol=2e-2), "mismatch vs reference"

    print("KERNEL_OK")
</pallas_src>

<mosaic_0001>
module attributes {stable_mosaic.version = 11 : i64} {
  func.func @attention_kernel(%arg0: i32, %arg1: memref<1x8x32xbf16, #tpu.memory_space<vmem>>, %arg2: memref<4x32x48xbf16, #tpu.memory_space<vmem>>, %arg3: memref<4x16x32xbf16, #tpu.memory_space<vmem>>, %arg4: memref<1x32xf32, #tpu.memory_space<vmem>>, %arg5: memref<1x8x32xf32, #tpu.memory_space<vmem>>) attributes {dimension_semantics = [#tpu.dimension_semantics<parallel>], iteration_bounds = array<i64: 2>, scalar_prefetch = 0 : i64, scratch_operands = 0 : i64, tpu.core_type = #tpu.core_type<tc>, window_params = [{transform_indices = @transform_0, window_bounds = array<i64: 1, 8, 32>}, {pipeline_mode = #tpu.pipeline_mode<synchronous>, transform_indices = @transform_1, window_bounds = array<i64: 4, 32, 48>}, {pipeline_mode = #tpu.pipeline_mode<synchronous>, transform_indices = @transform_2, window_bounds = array<i64: 4, 16, 32>}, {pipeline_mode = #tpu.pipeline_mode<synchronous>, transform_indices = @transform_3, window_bounds = array<i64: 1, 32>}, {transform_indices = @transform_4, window_bounds = array<i64: 1, 8, 32>}]} {
    %c0 = arith.constant 0 : index
    %c0_0 = arith.constant 0 : index
    %c0_1 = arith.constant 0 : index
    %0 = vector.load %arg1[%c0, %c0_0, %c0_1] : memref<1x8x32xbf16, #tpu.memory_space<vmem>>, vector<1x8x32xbf16>
    %1 = vector.shape_cast %0 : vector<1x8x32xbf16> to vector<8x32xbf16>
    %c0_2 = arith.constant 0 : index
    %c0_3 = arith.constant 0 : index
    %2 = vector.load %arg4[%c0_2, %c0_3] : memref<1x32xf32, #tpu.memory_space<vmem>>, vector<1x32xf32>
    %3 = vector.shape_cast %2 : vector<1x32xf32> to vector<1x32xf32>
    %4 = vector.broadcast %3 : vector<1x32xf32> to vector<8x32xf32>
    %c0_i32 = arith.constant 0 : i32
    %5 = arith.index_cast %c0_i32 : i32 to index
    %c0_4 = arith.constant 0 : index
    %c0_5 = arith.constant 0 : index
    %6 = vector.load %arg2[%5, %c0_4, %c0_5] : memref<4x32x48xbf16, #tpu.memory_space<vmem>>, vector<1x32x48xbf16>
    %7 = vector.shape_cast %6 : vector<1x32x48xbf16> to vector<32x48xbf16>
    %cst = arith.constant dense<0.000000e+00> : vector<8x48xf32>
    %8 = tpu.matmul %1, %7, %cst {dimension_numbers = #tpu.dot_dimension_numbers<[1], [0], [0], [1], [0, 0, 1, 1], [], []>} : vector<8x32xbf16>, vector<32x48xbf16>, vector<8x48xf32> -> vector<8x48xf32>
    %9 = vector.extract_strided_slice %8 {offsets = [0, 0], sizes = [8, 16], strides = [1, 1]} : vector<8x48xf32> to vector<8x16xf32>
    %10 = arith.truncf %9 : vector<8x16xf32> to vector<8x16xbf16>
    %11 = vector.shape_cast %10 : vector<8x16xbf16> to vector<1x8x16xbf16>
    %12 = vector.extract_strided_slice %8 {offsets = [0, 16], sizes = [8, 16], strides = [1, 1]} : vector<8x48xf32> to vector<8x16xf32>
    %13 = arith.truncf %12 : vector<8x16xf32> to vector<8x16xbf16>
    %14 = vector.shape_cast %13 : vector<8x16xbf16> to vector<1x8x16xbf16>
    %15 = vector.extract_strided_slice %8 {offsets = [0, 32], sizes = [8, 16], strides = [1, 1]} : vector<8x48xf32> to vector<8x16xf32>
    %16 = arith.truncf %15 : vector<8x16xf32> to vector<8x16xbf16>
    %17 = vector.shape_cast %16 : vector<8x16xbf16> to vector<1x8x16xbf16>
    %cst_6 = arith.constant dense<0.000000e+00> : vector<1x8x8xf32>
    %18 = tpu.matmul %11, %14, %cst_6 {dimension_numbers = #tpu.dot_dimension_numbers<[2], [2], [1], [1], [0, 0, 0, 1, 1, 1], [0], [0]>} : vector<1x8x16xbf16>, vector<1x8x16xbf16>, vector<1x8x8xf32> -> vector<1x8x8xf32>
    %cst_7 = arith.constant dense<0xFF800000> : vector<1x8xf32>
    %19 = vector.multi_reduction <maximumf>, %18, %cst_7 [2] : vector<1x8x8xf32> to vector<1x8xf32>
    %20 = vector.shape_cast %19 : vector<1x8xf32> to vector<1x8x1xf32>
    %21 = vector.broadcast %20 : vector<1x8x1xf32> to vector<1x8x8xf32>
    %22 = arith.subf %18, %21 : vector<1x8x8xf32>
    %23 = math.exp %22 : vector<1x8x8xf32>
    %cst_8 = arith.constant dense<0.000000e+00> : vector<1x8xf32>
    %24 = vector.multi_reduction <add>, %23, %cst_8 [2] : vector<1x8x8xf32> to vector<1x8xf32>
    %25 = vector.shape_cast %24 : vector<1x8xf32> to vector<1x8x1xf32>
    %26 = arith.truncf %23 : vector<1x8x8xf32> to vector<1x8x8xbf16>
    %cst_9 = arith.constant dense<0.000000e+00> : vector<1x8x16xf32>
    %27 = tpu.matmul %26, %17, %cst_9 {dimension_numbers = #tpu.dot_dimension_numbers<[2], [1], [1], [2], [0, 0, 0, 1, 1, 2], [0], [0]>} : vector<1x8x8xbf16>, vector<1x8x16xbf16>, vector<1x8x16xf32> -> vector<1x8x16xf32>
    %28 = tpu.reciprocal %25 {approx = true} : vector<1x8x1xf32> -> vector<1x8x1xf32>
    %29 = vector.broadcast %28 : vector<1x8x1xf32> to vector<1x8x16xf32>
    %30 = arith.mulf %27, %29 : vector<1x8x16xf32>
    %31 = vector.shape_cast %30 : vector<1x8x16xf32> to vector<8x16xf32>
    %32 = arith.truncf %31 : vector<8x16xf32> to vector<8x16xbf16>
    %33 = arith.index_cast %c0_i32 : i32 to index
    %c0_10 = arith.constant 0 : index
    %c0_11 = arith.constant 0 : index
    %34 = vector.load %arg3[%33, %c0_10, %c0_11] : memref<4x16x32xbf16, #tpu.memory_space<vmem>>, vector<1x16x32xbf16>
    %35 = vector.shape_cast %34 : vector<1x16x32xbf16> to vector<16x32xbf16>
    %cst_12 = arith.constant dense<0.000000e+00> : vector<8x32xf32>
    %36 = tpu.matmul %32, %35, %cst_12 {dimension_numbers = #tpu.dot_dimension_numbers<[1], [0], [0], [1], [0, 0, 1, 1], [], []>} : vector<8x16xbf16>, vector<16x32xbf16>, vector<8x32xf32> -> vector<8x32xf32>
    %37 = arith.addf %4, %36 : vector<8x32xf32>
    %c1_i32 = arith.constant 1 : i32
    %38 = arith.index_cast %c1_i32 : i32 to index
    %c0_13 = arith.constant 0 : index
    %c0_14 = arith.constant 0 : index
    %39 = vector.load %arg2[%38, %c0_13, %c0_14] : memref<4x32x48xbf16, #tpu.memory_space<vmem>>, vector<1x32x48xbf16>
    %40 = vector.shape_cast %39 : vector<1x32x48xbf16> to vector<32x48xbf16>
    %cst_15 = arith.constant dense<0.000000e+00> : vector<8x48xf32>
    %41 = tpu.matmul %1, %40, %cst_15 {dimension_numbers = #tpu.dot_dimension_numbers<[1], [0], [0], [1], [0, 0, 1, 1], [], []>} : vector<8x32xbf16>, vector<32x48xbf16>, vector<8x48xf32> -> vector<8x48xf32>
    %42 = vector.extract_strided_slice %41 {offsets = [0, 0], sizes = [8, 16], strides = [1, 1]} : vector<8x48xf32> to vector<8x16xf32>
    %43 = arith.truncf %42 : vector<8x16xf32> to vector<8x16xbf16>
    %44 = vector.shape_cast %43 : vector<8x16xbf16> to vector<1x8x16xbf16>
    %45 = vector.extract_strided_slice %41 {offsets = [0, 16], sizes = [8, 16], strides = [1, 1]} : vector<8x48xf32> to vector<8x16xf32>
    %46 = arith.truncf %45 : vector<8x16xf32> to vector<8x16xbf16>
    %47 = vector.shape_cast %46 : vector<8x16xbf16> to vector<1x8x16xbf16>
    %48 = vector.extract_strided_slice %41 {offsets = [0, 32], sizes = [8, 16], strides = [1, 1]} : vector<8x48xf32> to vector<8x16xf32>
    %49 = arith.truncf %48 : vector<8x16xf32> to vector<8x16xbf16>
    %50 = vector.shape_cast %49 : vector<8x16xbf16> to vector<1x8x16xbf16>
    %cst_16 = arith.constant dense<0.000000e+00> : vector<1x8x8xf32>
    %51 = tpu.matmul %44, %47, %cst_16 {dimension_numbers = #tpu.dot_dimension_numbers<[2], [2], [1], [1], [0, 0, 0, 1, 1, 1], [0], [0]>} : vector<1x8x16xbf16>, vector<1x8x16xbf16>, vector<1x8x8xf32> -> vector<1x8x8xf32>
    %cst_17 = arith.constant dense<0xFF800000> : vector<1x8xf32>
    %52 = vector.multi_reduction <maximumf>, %51, %cst_17 [2] : vector<1x8x8xf32> to vector<1x8xf32>
    %53 = vector.shape_cast %52 : vector<1x8xf32> to vector<1x8x1xf32>
    %54 = vector.broadcast %53 : vector<1x8x1xf32> to vector<1x8x8xf32>
    %55 = arith.subf %51, %54 : vector<1x8x8xf32>
    %56 = math.exp %55 : vector<1x8x8xf32>
    %cst_18 = arith.constant dense<0.000000e+00> : vector<1x8xf32>
    %57 = vector.multi_reduction <add>, %56, %cst_18 [2] : vector<1x8x8xf32> to vector<1x8xf32>
    %58 = vector.shape_cast %57 : vector<1x8xf32> to vector<1x8x1xf32>
    %59 = arith.truncf %56 : vector<1x8x8xf32> to vector<1x8x8xbf16>
    %cst_19 = arith.constant dense<0.000000e+00> : vector<1x8x16xf32>
    %60 = tpu.matmul %59, %50, %cst_19 {dimension_numbers = #tpu.dot_dimension_numbers<[2], [1], [1], [2], [0, 0, 0, 1, 1, 2], [0], [0]>} : vector<1x8x8xbf16>, vector<1x8x16xbf16>, vector<1x8x16xf32> -> vector<1x8x16xf32>
    %61 = tpu.reciprocal %58 {approx = true} : vector<1x8x1xf32> -> vector<1x8x1xf32>
    %62 = vector.broadcast %61 : vector<1x8x1xf32> to vector<1x8x16xf32>
    %63 = arith.mulf %60, %62 : vector<1x8x16xf32>
    %64 = vector.shape_cast %63 : vector<1x8x16xf32> to vector<8x16xf32>
    %65 = arith.truncf %64 : vector<8x16xf32> to vector<8x16xbf16>
    %66 = arith.index_cast %c1_i32 : i32 to index
    %c0_20 = arith.constant 0 : index
    %c0_21 = arith.constant 0 : index
    %67 = vector.load %arg3[%66, %c0_20, %c0_21] : memref<4x16x32xbf16, #tpu.memory_space<vmem>>, vector<1x16x32xbf16>
    %68 = vector.shape_cast %67 : vector<1x16x32xbf16> to vector<16x32xbf16>
    %cst_22 = arith.constant dense<0.000000e+00> : vector<8x32xf32>
    %69 = tpu.matmul %65, %68, %cst_22 {dimension_numbers = #tpu.dot_dimension_numbers<[1], [0], [0], [1], [0, 0, 1, 1], [], []>} : vector<8x16xbf16>, vector<16x32xbf16>, vector<8x32xf32> -> vector<8x32xf32>
    %70 = arith.addf %37, %69 : vector<8x32xf32>
    %c2_i32 = arith.constant 2 : i32
    %71 = arith.index_cast %c2_i32 : i32 to index
    %c0_23 = arith.constant 0 : index
    %c0_24 = arith.constant 0 : index
    %72 = vector.load %arg2[%71, %c0_23, %c0_24] : memref<4x32x48xbf16, #tpu.memory_space<vmem>>, vector<1x32x48xbf16>
    %73 = vector.shape_cast %72 : vector<1x32x48xbf16> to vector<32x48xbf16>
    %cst_25 = arith.constant dense<0.000000e+00> : vector<8x48xf32>
    %74 = tpu.matmul %1, %73, %cst_25 {dimension_numbers = #tpu.dot_dimension_numbers<[1], [0], [0], [1], [0, 0, 1, 1], [], []>} : vector<8x32xbf16>, vector<32x48xbf16>, vector<8x48xf32> -> vector<8x48xf32>
    %75 = vector.extract_strided_slice %74 {offsets = [0, 0], sizes = [8, 16], strides = [1, 1]} : vector<8x48xf32> to vector<8x16xf32>
    %76 = arith.truncf %75 : vector<8x16xf32> to vector<8x16xbf16>
    %77 = vector.shape_cast %76 : vector<8x16xbf16> to vector<1x8x16xbf16>
    %78 = vector.extract_strided_slice %74 {offsets = [0, 16], sizes = [8, 16], strides = [1, 1]} : vector<8x48xf32> to vector<8x16xf32>
    %79 = arith.truncf %78 : vector<8x16xf32> to vector<8x16xbf16>
    %80 = vector.shape_cast %79 : vector<8x16xbf16> to vector<1x8x16xbf16>
    %81 = vector.extract_strided_slice %74 {offsets = [0, 32], sizes = [8, 16], strides = [1, 1]} : vector<8x48xf32> to vector<8x16xf32>
    %82 = arith.truncf %81 : vector<8x16xf32> to vector<8x16xbf16>
    %83 = vector.shape_cast %82 : vector<8x16xbf16> to vector<1x8x16xbf16>
    %cst_26 = arith.constant dense<0.000000e+00> : vector<1x8x8xf32>
    %84 = tpu.matmul %77, %80, %cst_26 {dimension_numbers = #tpu.dot_dimension_numbers<[2], [2], [1], [1], [0, 0, 0, 1, 1, 1], [0], [0]>} : vector<1x8x16xbf16>, vector<1x8x16xbf16>, vector<1x8x8xf32> -> vector<1x8x8xf32>
    %cst_27 = arith.constant dense<0xFF800000> : vector<1x8xf32>
    %85 = vector.multi_reduction <maximumf>, %84, %cst_27 [2] : vector<1x8x8xf32> to vector<1x8xf32>
    %86 = vector.shape_cast %85 : vector<1x8xf32> to vector<1x8x1xf32>
    %87 = vector.broadcast %86 : vector<1x8x1xf32> to vector<1x8x8xf32>
    %88 = arith.subf %84, %87 : vector<1x8x8xf32>
    %89 = math.exp %88 : vector<1x8x8xf32>
    %cst_28 = arith.constant dense<0.000000e+00> : vector<1x8xf32>
    %90 = vector.multi_reduction <add>, %89, %cst_28 [2] : vector<1x8x8xf32> to vector<1x8xf32>
    %91 = vector.shape_cast %90 : vector<1x8xf32> to vector<1x8x1xf32>
    %92 = arith.truncf %89 : vector<1x8x8xf32> to vector<1x8x8xbf16>
    %cst_29 = arith.constant dense<0.000000e+00> : vector<1x8x16xf32>
    %93 = tpu.matmul %92, %83, %cst_29 {dimension_numbers = #tpu.dot_dimension_numbers<[2], [1], [1], [2], [0, 0, 0, 1, 1, 2], [0], [0]>} : vector<1x8x8xbf16>, vector<1x8x16xbf16>, vector<1x8x16xf32> -> vector<1x8x16xf32>
    %94 = tpu.reciprocal %91 {approx = true} : vector<1x8x1xf32> -> vector<1x8x1xf32>
    %95 = vector.broadcast %94 : vector<1x8x1xf32> to vector<1x8x16xf32>
    %96 = arith.mulf %93, %95 : vector<1x8x16xf32>
    %97 = vector.shape_cast %96 : vector<1x8x16xf32> to vector<8x16xf32>
    %98 = arith.truncf %97 : vector<8x16xf32> to vector<8x16xbf16>
    %99 = arith.index_cast %c2_i32 : i32 to index
    %c0_30 = arith.constant 0 : index
    %c0_31 = arith.constant 0 : index
    %100 = vector.load %arg3[%99, %c0_30, %c0_31] : memref<4x16x32xbf16, #tpu.memory_space<vmem>>, vector<1x16x32xbf16>
    %101 = vector.shape_cast %100 : vector<1x16x32xbf16> to vector<16x32xbf16>
    %cst_32 = arith.constant dense<0.000000e+00> : vector<8x32xf32>
    %102 = tpu.matmul %98, %101, %cst_32 {dimension_numbers = #tpu.dot_dimension_numbers<[1], [0], [0], [1], [0, 0, 1, 1], [], []>} : vector<8x16xbf16>, vector<16x32xbf16>, vector<8x32xf32> -> vector<8x32xf32>
    %103 = arith.addf %70, %102 : vector<8x32xf32>
    %c3_i32 = arith.constant 3 : i32
    %104 = arith.index_cast %c3_i32 : i32 to index
    %c0_33 = arith.constant 0 : index
    %c0_34 = arith.constant 0 : index
    %105 = vector.load %arg2[%104, %c0_33, %c0_34] : memref<4x32x48xbf16, #tpu.memory_space<vmem>>, vector<1x32x48xbf16>
    %106 = vector.shape_cast %105 : vector<1x32x48xbf16> to vector<32x48xbf16>
    %cst_35 = arith.constant dense<0.000000e+00> : vector<8x48xf32>
    %107 = tpu.matmul %1, %106, %cst_35 {dimension_numbers = #tpu.dot_dimension_numbers<[1], [0], [0], [1], [0, 0, 1, 1], [], []>} : vector<8x32xbf16>, vector<32x48xbf16>, vector<8x48xf32> -> vector<8x48xf32>
    %108 = vector.extract_strided_slice %107 {offsets = [0, 0], sizes = [8, 16], strides = [1, 1]} : vector<8x48xf32> to vector<8x16xf32>
    %109 = arith.truncf %108 : vector<8x16xf32> to vector<8x16xbf16>
    %110 = vector.shape_cast %109 : vector<8x16xbf16> to vector<1x8x16xbf16>
    %111 = vector.extract_strided_slice %107 {offsets = [0, 16], sizes = [8, 16], strides = [1, 1]} : vector<8x48xf32> to vector<8x16xf32>
    %112 = arith.truncf %111 : vector<8x16xf32> to vector<8x16xbf16>
    %113 = vector.shape_cast %112 : vector<8x16xbf16> to vector<1x8x16xbf16>
    %114 = vector.extract_strided_slice %107 {offsets = [0, 32], sizes = [8, 16], strides = [1, 1]} : vector<8x48xf32> to vector<8x16xf32>
    %115 = arith.truncf %114 : vector<8x16xf32> to vector<8x16xbf16>
    %116 = vector.shape_cast %115 : vector<8x16xbf16> to vector<1x8x16xbf16>
    %cst_36 = arith.constant dense<0.000000e+00> : vector<1x8x8xf32>
    %117 = tpu.matmul %110, %113, %cst_36 {dimension_numbers = #tpu.dot_dimension_numbers<[2], [2], [1], [1], [0, 0, 0, 1, 1, 1], [0], [0]>} : vector<1x8x16xbf16>, vector<1x8x16xbf16>, vector<1x8x8xf32> -> vector<1x8x8xf32>
    %cst_37 = arith.constant dense<0xFF800000> : vector<1x8xf32>
    %118 = vector.multi_reduction <maximumf>, %117, %cst_37 [2] : vector<1x8x8xf32> to vector<1x8xf32>
    %119 = vector.shape_cast %118 : vector<1x8xf32> to vector<1x8x1xf32>
    %120 = vector.broadcast %119 : vector<1x8x1xf32> to vector<1x8x8xf32>
    %121 = arith.subf %117, %120 : vector<1x8x8xf32>
    %122 = math.exp %121 : vector<1x8x8xf32>
    %cst_38 = arith.constant dense<0.000000e+00> : vector<1x8xf32>
    %123 = vector.multi_reduction <add>, %122, %cst_38 [2] : vector<1x8x8xf32> to vector<1x8xf32>
    %124 = vector.shape_cast %123 : vector<1x8xf32> to vector<1x8x1xf32>
    %125 = arith.truncf %122 : vector<1x8x8xf32> to vector<1x8x8xbf16>
    %cst_39 = arith.constant dense<0.000000e+00> : vector<1x8x16xf32>
    %126 = tpu.matmul %125, %116, %cst_39 {dimension_numbers = #tpu.dot_dimension_numbers<[2], [1], [1], [2], [0, 0, 0, 1, 1, 2], [0], [0]>} : vector<1x8x8xbf16>, vector<1x8x16xbf16>, vector<1x8x16xf32> -> vector<1x8x16xf32>
    %127 = tpu.reciprocal %124 {approx = true} : vector<1x8x1xf32> -> vector<1x8x1xf32>
    %128 = vector.broadcast %127 : vector<1x8x1xf32> to vector<1x8x16xf32>
    %129 = arith.mulf %126, %128 : vector<1x8x16xf32>
    %130 = vector.shape_cast %129 : vector<1x8x16xf32> to vector<8x16xf32>
    %131 = arith.truncf %130 : vector<8x16xf32> to vector<8x16xbf16>
    %132 = arith.index_cast %c3_i32 : i32 to index
    %c0_40 = arith.constant 0 : index
    %c0_41 = arith.constant 0 : index
    %133 = vector.load %arg3[%132, %c0_40, %c0_41] : memref<4x16x32xbf16, #tpu.memory_space<vmem>>, vector<1x16x32xbf16>
    %134 = vector.shape_cast %133 : vector<1x16x32xbf16> to vector<16x32xbf16>
    %cst_42 = arith.constant dense<0.000000e+00> : vector<8x32xf32>
    %135 = tpu.matmul %131, %134, %cst_42 {dimension_numbers = #tpu.dot_dimension_numbers<[1], [0], [0], [1], [0, 0, 1, 1], [], []>} : vector<8x16xbf16>, vector<16x32xbf16>, vector<8x32xf32> -> vector<8x32xf32>
    %136 = arith.addf %103, %135 : vector<8x32xf32>
    %c4_i32 = arith.constant 4 : i32
    %137 = vector.shape_cast %136 : vector<8x32xf32> to vector<1x8x32xf32>
    %c0_43 = arith.constant 0 : index
    %c0_44 = arith.constant 0 : index
    %c0_45 = arith.constant 0 : index
    %138 = vector.load %arg5[%c0_43, %c0_44, %c0_45] : memref<1x8x32xf32, #tpu.memory_space<vmem>>, vector<1x8x32xf32>
    tpu.vector_store %arg5[%c0_43, %c0_44, %c0_45], %137 {strides = array<i32>} : memref<1x8x32xf32, #tpu.memory_space<vmem>>, vector<1x8x32xf32>,
    return
  }
  func.func @transform_0(%arg0: i32) -> (i32, i32, i32) {
    %c0_i32 = arith.constant 0 : i32
    %c0_i32_0 = arith.constant 0 : i32
    %c0_i32_1 = arith.constant 0 : i32
    return %arg0, %c0_i32, %c0_i32_0 : i32, i32, i32
  }
  func.func @transform_1(%arg0: i32) -> (i32, i32, i32) {
    %c0_i32 = arith.constant 0 : i32
    %c0_i32_0 = arith.constant 0 : i32
    %c0_i32_1 = arith.constant 0 : i32
    %c0_i32_2 = arith.constant 0 : i32
    return %c0_i32, %c0_i32_0, %c0_i32_1 : i32, i32, i32
  }
  func.func @transform_2(%arg0: i32) -> (i32, i32, i32) {
    %c0_i32 = arith.constant 0 : i32
    %c0_i32_0 = arith.constant 0 : i32
    %c0_i32_1 = arith.constant 0 : i32
    %c0_i32_2 = arith.constant 0 : i32
    return %c0_i32, %c0_i32_0, %c0_i32_1 : i32, i32, i32
  }
  func.func @transform_3(%arg0: i32) -> (i32, i32) {
    %c0_i32 = arith.constant 0 : i32
    %c0_i32_0 = arith.constant 0 : i32
    %c0_i32_1 = arith.constant 0 : i32
    return %c0_i32, %c0_i32_0 : i32, i32
  }
  func.func @transform_4(%arg0: i32) -> (i32, i32, i32) {
    %c0_i32 = arith.constant 0 : i32
    %c0_i32_0 = arith.constant 0 : i32
    %c0_i32_1 = arith.constant 0 : i32
    return %arg0, %c0_i32, %c0_i32_0 : i32, i32, i32
  }
}

</mosaic_0001>

<bundles_post_ra>
// kernel: tpu_custom_call.1
= control target key start
LH: loop header
LB: loop body
LE: loop exit
PB: predicated region body
PF: predicated region fallthrough
CT: control target
= control target key end

     0   :  { %9 = vsyncpa [#allocation3], 0  ;;  %s2068_s0 = inlined_call_operand.hbm [shape: bf16[2,8,32], index: 0, kind: input, shape index: {}]   ;;  %s2069_s1 = inlined_call_operand.hbm [shape: bf16[4,32,48], index: 1, kind: input, shape index: {}]   ;;  %s2070_s2 = inlined_call_operand.hbm [shape: bf16[4,16,32], index: 2, kind: input, shape index: {}]   ;;  %s2071_s3 = inlined_call_operand.vmem [shape: f32[1,32], index: 3, kind: input, shape index: {}]   ;;  %s2072_s4 = inlined_call_operand.hbm [shape: f32[2,8,32], index: 4, kind: output, shape index: {}]  }
   0x1   :  { %11 = vsyncpa [#allocation3 + $0x1], 0 }
   0x2   :  { %12 = vsyncpa [#allocation6], 0 }
   0x3   :  { %13 = vsyncpa [#allocation4], 0 }
   0x4   :  { %15 = vsyncpa [#allocation4 + $0x1], 0  ;;  %s1736_s15 = smov 0   ;;  %s1738_s16 = smov 0  }
   0x5   :  { %s1740_s17 = smov 0   ;;  %s1742_s18 = smov 0  }
   0x6 LB: > { %s1757_s19 = sadd.s32 4294967295, %s1699_s18   ;;  %s1244_s20 = sadd.s32 4294967294, %s1699_s18   ;;  %s1699_s18 = sphi %s1742_s18, %s2092_s18   ;;  %s1695_s17 = sphi %s1740_s17, %s2091_s17   ;;  %s1691_s16 = sphi %s1738_s16, %s2090_s16   ;;  %s1687_s15 = sphi %s1736_s15, %s2089_s15  }
   0x7   : > { %p41_p0 = scmp.ne.s32.totalorder %s1691_s16, %s1687_s15  ;;  %p2073_p1 = scmp.eq.s32.totalorder %s1757_s19, 0 }
   0x8   : > { %p134_p3 = scmp.eq.s32.totalorder %s1244_s20, 1  ;;  %p1245_p5 = scmp.ge.s32.totalorder %s1699_s18, 1 }
   0x9   : > { %p1766_p4 = por %p2073_p1, %p41_p0  ;;  %p141_p7 = scmp.lt.s32.totalorder %s1699_s18, 3 }
   0xa   : > { %p1771_p6 = por %p134_p3, %p41_p0  ;;  %s1701_s24 = smov [#allocation5]  }
   0xb   : > { %s2076_s21 = scalar_select %p1766_p4, 1, 0 }
   0xc   : > { %s2077_s22 = scalar_select %p1771_p6, 1, 0 }
   0xd   : > { %p1776_p8 = pnand %p1245_p5, %p141_p7  ;;  %s153_s25 = sshll.u32 %s1701_s24, 4  ;;  %s1780_s25 = int_to_ptr.vmem [resolvable:$true] %s153_s25 }
   0xe   : > { %s1702_s27 = smov [#allocation7]   ;;  %s1543_s5 = scalar_lea.hbm %s2069_s1, 1024 }
   0xf   : > { %p1454_p9 = pneg %p1776_p8  ;;  %s166_s28 = sshll.u32 %s1702_s27, 4  ;;  %s1791_s28 = int_to_ptr.vmem [resolvable:$true] %s166_s28 }
  0x10   : > { %p1544_p12 = scmp.ne.s32.totalorder %s2069_s1, %s1543_s5  ;;  %p1550_p5 = scmp.lt.u32.totalorder %s1543_s5, %s2069_s1 }
  0x11   : > { %p1787_p11 = pnand %p1454_p9, %p2073_p1 }
  0x13   : > { %p1545_p13 = pneg %p1787_p11 }
  0x15   : > { %p1546_p0 = pnand %p1545_p13, %p1544_p12 }
  0x17   : > { %p1547_p3 = pneg %p1546_p0 }
  0x19   : > { %p1552_p7 = pnand %p1550_p5, %p1547_p3 }
  0x1b   : > { %1555 = shalt.err (!%p1552_p7)
}
  0x1c   : > { %s1556_s10 = scalar_lea.vmem %s1780_s25, 1024  ;;  %p1564_p2 = scmp.lt.s32.totalorder %s1780_s25, %s1780_s25 }
  0x1d   : > { %p1557_p9 = scmp.ne.s32.totalorder %s1780_s25, %s1556_s10  ;;  %p1565_p12 = scmp.lt.s32.totalorder %s1556_s10, %s1556_s10 }
  0x1f   : > { %p1559_p10 = pnand %p1557_p9, %p1545_p13  ;;  %p1566_p0 = por %p1565_p12, %p1564_p2 }
  0x21   : > { %p1560_p1 = pneg %p1559_p10 }
  0x23   : > { %p1567_p6 = pnand %p1566_p0, %p1560_p1 }
  0x25   : > { %1570 = shalt.err (!%p1567_p6)
}
  0x26   : > { %s1703_s11 = smov 64   ;;  %s1704_s12 = smov 4  }
  0x27   : > { %1457 = dma.hbm_to_vmem [thread:$0]  (!%p1787_p11), %s2069_s1, 1024, %s1780_s25, [#allocation6], %s1703_s11, %s1703_s11, %s1704_s12  }
  0x28   : > { %s1571_s27 = scalar_lea.hbm %s2070_s2, 512 }
  0x29   : > { %p1572_p2 = scmp.ne.s32.totalorder %s2070_s2, %s1571_s27  ;;  %p1578_p10 = scmp.lt.u32.totalorder %s1571_s27, %s2070_s2 }
  0x2b   : > { %p1574_p1 = pnand %p1572_p2, %p1545_p13 }
  0x2d   : > { %p1575_p6 = pneg %p1574_p1 }
  0x2f   : > { %p1580_p3 = pnand %p1578_p10, %p1575_p6 }
  0x31   : > { %1583 = shalt.err (!%p1580_p3)
}
  0x32   : > { %s1584_s25 = scalar_lea.vmem %s1791_s28, 512  ;;  %p1592_p12 = scmp.lt.s32.totalorder %s1791_s28, %s1791_s28 }
  0x33   : > { %p1585_p5 = scmp.ne.s32.totalorder %s1791_s28, %s1584_s25  ;;  %p1593_p0 = scmp.lt.s32.totalorder %s1584_s25, %s1584_s25 }
  0x35   : > { %p1587_p7 = pnand %p1585_p5, %p1545_p13  ;;  %p1594_p2 = por %p1593_p0, %p1592_p12 }
  0x37   : > { %p1588_p9 = pneg %p1587_p7 }
  0x39   : > { %p1595_p1 = pnand %p1594_p2, %p1588_p9 }
  0x3b   : > { %1598 = shalt.err (!%p1595_p1)
}
  0x3c   : > { %1460 = dma.hbm_to_vmem [thread:$0]  (!%p1787_p11), %s2070_s2, 512, %s1791_s28, [#allocation6], %s1703_s11, %s1703_s11, %s1704_s12  }
  0x3d   : > { %s1846_s9 = sadd.s32 1, %s1699_s18   ;;  %s28_s26 = sadd.s32 1, %s1695_s17 }
  0x3e   : > { %s25_s10 = ssub.s32 %s1699_s18, %s1846_s9  ;;  %p35_p13 = scmp.ne.s32.totalorder %s1695_s17, %s1691_s16 }
  0x3f   : > { %p26_p6 = scmp.eq.s32.totalorder %s25_s10, 0  ;;  %p36_p10 = scmp.eq.s32.totalorder %s1699_s18, 0 }
  0x40   : > { %p2080_p3 = scmp.eq.s32.totalorder %s1757_s19, 1  ;;  %p1471_p7 = scmp.lt.s32.totalorder %s1699_s18, 2 }
  0x41   : > { %s1862_s14 = scalar_select %p26_p6, %s1695_s17, %s28_s26  }
  0x42   : > { %p1856_p5 = por %p2080_p3, %p35_p13  ;;  %p37_p9 = por %p36_p10, %p35_p13 }
  0x43   : > { %s183_s20 = sand.u32 1, %s1695_s17   ;;  %s1250_s28 = sshll.u32 %s1699_s18, 6 }
  0x44   : > { %s2081_s13 = scalar_select %p1856_p5, 1, 0 }
  0x45   : > { %s1249_s24 = sshll.u32 %s183_s20, 2  ;;  %s1869_s27 = scalar_lea.hbm %s2068_s0, %s1250_s28 }
  0x46   : > { %s187_s29 = scalar_lea.vmem [#allocation2], %s1249_s24  ;;  %p1873_p11 = pnand %p1471_p7, %p37_p9 }
  0x47   : > { %s194_s30 = sshll.u32 %s187_s29, 4  ;;  %s184_s6 = scalar_lea.sflag [#allocation3], %s183_s20  ;;  %s1871_s30 = int_to_ptr.vmem [resolvable:$true] %s194_s30 }
  0x48   : > { %s1599_s25 = scalar_lea.hbm %s1869_s27, 64  ;;  %p1601_p0 = pneg %p1873_p11 }
  0x49   : > { %p1600_p12 = scmp.ne.s32.totalorder %s1869_s27, %s1599_s25  ;;  %s1604_s26 = scalar_lea.hbm %s2068_s0, 128 }
  0x4a   : > { %p1605_p13 = scmp.lt.u32.totalorder %s1869_s27, %s2068_s0  ;;  %p1606_p6 = scmp.lt.u32.totalorder %s1604_s26, %s1599_s25 }
  0x4b   : > { %p1602_p2 = pnand %p1601_p0, %p1600_p12  ;;  %p1608_p3 = scmp.lt.u32.totalorder %s1599_s25, %s1869_s27 }
  0x4c   : > { %p1607_p10 = por %p1606_p6, %p1605_p13 }
  0x4d   : > { %p1603_p1 = pneg %p1602_p2 }
  0x4e   : > { %p1609_p7 = por %p1608_p3, %p1607_p10 }
  0x50   : > { %p1610_p9 = pnand %p1609_p7, %p1603_p1 }
  0x52   : > { %1613 = shalt.err (!%p1610_p9)
}
  0x53   : > { %s1614_s20 = scalar_lea.vmem %s1871_s30, 64  ;;  %s1705_s28 = smov [#allocation2]  }
  0x54   : > { %p1615_p12 = scmp.ne.s32.totalorder %s1871_s30, %s1614_s20  ;;  %s1619_s11 = sshll.u32 %s1705_s28, 4  ;;  %s1620_s11 = int_to_ptr.vmem [resolvable:$false] %s1619_s11 }
  0x55   : > { %s1621_s12 = scalar_lea.vmem %s1620_s11, 128  ;;  %p1622_p4 = scmp.lt.s32.totalorder %s1871_s30, %s1620_s11 }
  0x56   : > { %p1617_p2 = pnand %p1615_p12, %p1601_p0  ;;  %p1623_p13 = scmp.lt.s32.totalorder %s1621_s12, %s1614_s20 }
  0x58   : > { %p1618_p5 = pneg %p1617_p2  ;;  %p1624_p6 = por %p1623_p13, %p1622_p4 }
  0x5a   : > { %p1625_p10 = pnand %p1624_p6, %p1618_p5 }
  0x5c   : > { %1628 = shalt.err (!%p1625_p10)
}
  0x5d   : > { %1464 = dma.hbm_to_vmem [thread:$0]  (!%p1873_p11), %s1869_s27, 64, %s1871_s30, %s184_s6  }
  0x5e   : > { %203 = sbr.rel (%p1776_p8) target bundleno = 3419 (0xd5b), region = 36  ;;  %s1905_s29 = sand.u32 (!%p1776_p8), 1, %s1691_s16  }
  0x5f   : > { %s1252_s25 = sshll.u32 (!%p1776_p8), %s1905_s29, 2  ;;  %s206_s7 = scalar_lea.sflag (!%p1776_p8), [#allocation3], %s1905_s29 }
  0x60   : > { %s209_s8 = scalar_lea.vmem (!%p1776_p8), [#allocation2], %s1252_s25  ;;  %p2083_p4 = scmp.ne.s32.totalorder (!%p1776_p8), %s2076_s21, 0 }
  0x65   : > { %1674 = dma.done.wait (%p2083_p4), %s206_s7, 64  }
  0x66   : > { %1676 = vsyncadd (%p2083_p4), %s206_s7, 4294967232  ;;  %p2084_p5 = scmp.eq.s32.totalorder %s1757_s19, 0 }
  0x68   : > { %1678 = dma.done.wait (%p2084_p5), [#allocation6], 1536   ;;  %p2085_p11 = pmov %p2084_p5 }
  0x69   : > { %v1706_v0 = vmov 0.0   ;;  %vm1707_vm0 = vmmov 0   ;;  %v1515_v1 = vld [vmem:[#allocation5] sm:$0xff]   ;;  %v1516_v2 = vld [vmem:[#allocation5 + $0x8] sm:$0xff]   ;;  %vm267_vm1 = vcmask 261120   ;;  %s1708_s21 = smov 96  }
  0x6a   : > { %1680 = vsyncadd (%p2085_p11), [#allocation6], 4294965760  ;;  %1325 = vmatprep.subr.bf16.mxu0 %v1706_v0  ;;  %1329 = vmatprep.mubr.msk.bf16.mxu0 %vm1707_vm0, %v1706_v0  ;;  %v1924_v3 = vld [vmem:[%s209_s8] sm:$0xf]  ;;  %s1709_s23 = smov 112   ;;  %vm378_vm2 = vcmask 1043456  }
  0x6b   : > { %1333 = vmatprep.subr.bf16.mxu1 %v1706_v0  ;;  %1335 = vmatprep.mubr.msk.bf16.mxu1 %vm1707_vm0, %v1706_v0  ;;  %vm315_vm3 = vcmask 130048   ;;  %vm362_vm4 = vcmask 64512   ;;  %v1517_v22 = vld [vmem:[#allocation5 + $0x10] sm:$0xff]   ;;  %v1518_v25 = vld [vmem:[#allocation5 + $0x18] sm:$0xff]   ;;  %v1519_v26 = vld [vmem:[#allocation7] sm:$0xff]   ;;  %s1255_s27 = sshll.u32 %s1905_s29, 3 }
  0x6c   : > { %1326 = vmatpush3.bf16.msra.mxu0 %v1515_v1  ;;  %v1520_v53 = vld [vmem:[#allocation5 + $0x20] sm:$0xff]   ;;  %v1521_v56 = vld [vmem:[#allocation5 + $0x28] sm:$0xff]   ;;  %s1286_s6 = sshll.u32 %s1757_s19, 7  ;;  %s241_s26 = scalar_lea.vmem [#allocation8], %s1255_s27 }
  0x6d   : > { %1327 = vmatprep.subr.bf16.mxu0 %v1706_v0  ;;  %v1522_v57 = vld [vmem:[#allocation7 + $0x8] sm:$0xff]   ;;  %s1155_s10 = sshll.u32 %s241_s26, 4  ;;  %s2023_s28 = scalar_lea.hbm %s2072_s4, %s1286_s6  ;;  %s2025_s10 = int_to_ptr.vmem [resolvable:$true] %s1155_s10 }
  0x6e   : > { %s1142_s19 = scalar_lea.sflag [#allocation4], %s1905_s29  ;;  %s1629_s11 = scalar_lea.vmem %s2025_s10, 128 }
  0x6f   : > { %p1630_p8 = scmp.ne.s32.totalorder %s2025_s10, %s1629_s11  ;;  %p2086_p0 = scmp.ne.s32.totalorder %s2081_s13, 0 }
  0x70   : > { %1328 = vmatpush3.bf16.msra.mxu0 %v1516_v2  ;;  %s1710_s12 = smov [#allocation8]  }
  0x71   : > { %1339 = vmatprep.subr.bf16.mxu0 %v1706_v0  ;;  %p1631_p1 = pnand %p1630_p8, %p2086_p0  ;;  %s1633_s25 = sshll.u32 %s1710_s12, 4  ;;  %s1634_s25 = int_to_ptr.vmem [resolvable:$false] %s1633_s25 }
  0x72   : > { %s1635_s7 = scalar_lea.vmem %s1634_s25, 256  ;;  %p1636_p7 = scmp.lt.s32.totalorder %s2025_s10, %s1634_s25 }
  0x73   : > { %1330 = vmatmul.mubr.msk.bf16.vlgmr.msra.gmra.mrb[0].mxu0 %vm267_vm1, %v1924_v3  ;;  %p1632_p3 = pneg %p1631_p1  ;;  %p1637_p9 = scmp.lt.s32.totalorder %s1635_s7, %s1629_s11 }
  0x74   : > { %1341 = vmatprep.mubr.msk.bf16.mxu0 %vm1707_vm0, %v1706_v0 }
  0x75   : > { %p1638_p12 = por %p1637_p9, %p1636_p7 }
  0x77   : > { %p1639_p2 = pnand %p1638_p12, %p1632_p3 }
 0x146   : > { %v305_v4 = vpop.f32.mrb[0].mxu0 }
 0x147   : > { %v311_v5 = vpack.c.bf16 %v305_v4, %v305_v4  ;;  %v1331_v6 = vpop.f32.mrb[1].mxu0 }
 0x148   : > { %v308_v7 = vpop.f32.mrb[2].mxu0 }
 0x149   : > { %373 = vrot.lane.b32.xlu1 %v311_v5, %s1708_s21  ;;  %313 = vrot.lane.b32.xlu0 %v311_v5, %s1709_s23  ;;  %v1332_v8 = vpop.f32.mrb[3].mxu0 }
 0x1bb   : > { %v374_v9 = vpop.permute.xlu1 %373  ;;  %v314_v10 = vpop.permute.xlu0 %313 }
 0x1bc   : > { %v380_v11 = vsel %vm378_vm2, %v374_v9, 0  ;;  %v320_v12 = vsel %vm315_vm3, %v314_v10, 0 }
 0x1bd   : > { %1334 = vmatpush3.bf16.xpose.msra.mxu1 %v320_v12  ;;  %1340 = vmatpush3.bf16.msra.mxu0 %v380_v11 }
 0x1be   : > { %1351 = vmatprep.subr.bf16.mxu0 %v1706_v0  ;;  %1345 = vmatprep.subr.bf16.mxu1 %v1706_v0 }
 0x1c4   : > { %1336 = vmatmul.mubr.msk.bf16.vlgmr.msra.gmra.mrb[0].mxu1 %vm315_vm3, %v311_v5 }
 0x1c5   : > { %1347 = vmatprep.mubr.msk.bf16.mxu1 %vm1707_vm0, %v1706_v0  ;;  %1346 = vmatpush3.bf16.msra.mxu1 %v1519_v26  ;;  %v1525_v26 = vld [vmem:[#allocation7 + $0x10] sm:$0xff]  }
 0x1c6   : > { %1359 = vmatprep.subr.bf16.mxu1 %v1706_v0 }
 0x297   : > { %v356_v13 = vpop.f32.mrb[0].mxu1 }
 0x298   : > { %v1337_v14 = vpop.f32.mrb[1].mxu1  ;;  %v363_v15 = vsel %vm362_vm4, %v356_v13, -inf }
 0x299   : > { %364 = vmax.xlane.f32.xlu0 %v363_v15  ;;  %v359_v16 = vpop.f32.mrb[2].mxu1 }
 0x29a   : > { %v1338_v17 = vpop.f32.mrb[3].mxu1 }
 0x326   : > { %v365_v18 = vpop.xlane.xlu0 %364 }
 0x327   : > { %v366_v19 = vsub.f32 %v356_v13, %v365_v18 }
 0x329   : > { %v367_v20 = vmul.f32 1.442695, %v366_v19 }
 0x32b   : > { %1527 = vpow2.f32 %v367_v20 }
 0x335   : > { %v1528_v21 = vpop.eup %1527 }
 0x336   : > { %v369_v23 = vsel %vm362_vm4, %v1528_v21, 0.0  ;;  %v372_v24 = vpack.c.bf16 %v1528_v21, %v1528_v21 }
 0x337   : > { %370 = vadd.xlane.f32.xlu1 %v369_v23 }
 0x338   : > { %1342 = vmatmul.mubr.msk.bf16.vlgmr.msra.gmra.mrb[4].mxu0 %vm362_vm4, %v372_v24 }
 0x339   : > { %1352 = vmatpush3.bf16.msra.mxu0 %v1517_v22  ;;  %1355 = vmatprep.mubr.msk.bf16.mxu0 %vm1707_vm0, %v1706_v0  ;;  %v1523_v22 = vld [vmem:[#allocation5 + $0x30] sm:$0xff]  }
 0x33a   : > { %1353 = vmatprep.subr.bf16.mxu0 %v1706_v0 }
 0x33d   : > { %1354 = vmatpush3.bf16.msra.mxu0 %v1518_v25  ;;  %v1524_v25 = vld [vmem:[#allocation5 + $0x38] sm:$0xff]  }
 0x33e   : > { %1365 = vmatprep.subr.bf16.mxu0 %v1706_v0 }
 0x340   : > { %1356 = vmatmul.mubr.msk.bf16.vlgmr.msra.gmra.mrb[8].mxu0 %vm267_vm1, %v1924_v3 }
 0x341   : > { %1367 = vmatprep.mubr.msk.bf16.mxu0 %vm1707_vm0, %v1706_v0 }
 0x3c4   : > { %v371_v27 = vpop.xlane.xlu1 %370 }
 0x3c5   : > { %1529 = vrcp.f32 %v371_v27 }
 0x3cf   : > { %v1530_v28 = vpop.eup %1529 }
 0x40b   : > { %v416_v29 = vpop.f32.mrb[4].mxu0 }
 0x40c   : > { %v423_v30 = vmul.f32 %v1530_v28, %v416_v29  ;;  %v1343_v31 = vpop.f32.mrb[5].mxu0 }
 0x40d   : > { %v419_v32 = vpop.f32.mrb[6].mxu0 }
 0x40e   : > { %v424_v33 = vpack.c.bf16 %v423_v30, %v423_v30  ;;  %v1344_v34 = vpop.f32.mrb[7].mxu0 }
 0x410   : > { %1348 = vmatmul.mubr.msk.bf16.vlgmr.msra.gmra.mrb[4].mxu1 %vm315_vm3, %v424_v33 }
 0x411   : > { %1361 = vmatprep.mubr.msk.bf16.mxu1 %vm1707_vm0, %v1706_v0 }
 0x413   : > { %v528_v35 = vpop.f32.mrb[8].mxu0 }
 0x414   : > { %v534_v36 = vpack.c.bf16 %v528_v35, %v528_v35  ;;  %v1357_v37 = vpop.f32.mrb[9].mxu0 }
 0x415   : > { %v531_v38 = vpop.f32.mrb[10].mxu0 }
 0x416   : > { %536 = vrot.lane.b32.xlu0 %v534_v36, %s1709_s23  ;;  %v1358_v39 = vpop.f32.mrb[11].mxu0 }
 0x488   : > { %v537_v40 = vpop.permute.xlu0 %536 }
 0x489   : > { %v542_v41 = vsel %vm315_vm3, %v537_v40, 0 }
 0x48a   : > { %1360 = vmatpush3.bf16.xpose.msra.mxu1 %v542_v41 }
 0x48b   : > { %1371 = vmatprep.subr.bf16.mxu1 %v1706_v0 }
 0x491   : > { %1362 = vmatmul.mubr.msk.bf16.vlgmr.msra.gmra.mrb[8].mxu1 %vm315_vm3, %v534_v36 }
 0x492   : > { %1373 = vmatprep.mubr.msk.bf16.mxu1 %vm1707_vm0, %v1706_v0  ;;  %1372 = vmatpush3.bf16.msra.mxu1 %v1522_v57 }
 0x493   : > { %1385 = vmatprep.subr.bf16.mxu1 %v1706_v0 }
 0x564   : > { %v578_v42 = vpop.f32.mrb[8].mxu1 }
 0x565   : > { %v1363_v43 = vpop.f32.mrb[9].mxu1  ;;  %v584_v44 = vsel %vm362_vm4, %v578_v42, -inf }
 0x566   : > { %585 = vmax.xlane.f32.xlu1 %v584_v44  ;;  %v581_v45 = vpop.f32.mrb[10].mxu1 }
 0x567   : > { %v1364_v46 = vpop.f32.mrb[11].mxu1 }
 0x577   : > { %594 = vrot.lane.b32.xlu1 %v534_v36, %s1708_s21 }
 0x5f3   : > { %v586_v47 = vpop.xlane.xlu1 %585 }
 0x5f4   : > { %v587_v48 = vsub.f32 %v578_v42, %v586_v47 }
 0x5f6   : > { %v588_v49 = vmul.f32 1.442695, %v587_v48 }
 0x5f7   : > { %v595_v50 = vpop.permute.xlu1 %594 }
 0x5f8   : > { %1531 = vpow2.f32 %v588_v49  ;;  %v600_v51 = vsel %vm378_vm2, %v595_v50, 0 }
 0x5f9   : > { %1366 = vmatpush3.bf16.msra.mxu0 %v600_v51 }
 0x5fa   : > { %1377 = vmatprep.subr.bf16.mxu0 %v1706_v0 }
 0x602   : > { %v1532_v52 = vpop.eup %1531 }
 0x603   : > { %v590_v54 = vsel %vm362_vm4, %v1532_v52, 0.0  ;;  %v593_v55 = vpack.c.bf16 %v1532_v52, %v1532_v52 }
 0x604   : > { %591 = vadd.xlane.f32.xlu0 %v590_v54 }
 0x605   : > { %1368 = vmatmul.mubr.msk.bf16.vlgmr.msra.gmra.mrb[12].mxu0 %vm362_vm4, %v593_v55 }
 0x606   : > { %1378 = vmatpush3.bf16.msra.mxu0 %v1520_v53  ;;  %1381 = vmatprep.mubr.msk.bf16.mxu0 %vm1707_vm0, %v1706_v0 }
 0x607   : > { %1379 = vmatprep.subr.bf16.mxu0 %v1706_v0 }
 0x60a   : > { %1380 = vmatpush3.bf16.msra.mxu0 %v1521_v56 }
 0x60b   : > { %1391 = vmatprep.subr.bf16.mxu0 %v1706_v0 }
 0x60d   : > { %1382 = vmatmul.mubr.msk.bf16.vlgmr.msra.gmra.mrb[16].mxu0 %vm267_vm1, %v1924_v3 }
 0x60e   : > { %1393 = vmatprep.mubr.msk.bf16.mxu0 %vm1707_vm0, %v1706_v0 }
 0x691   : > { %v592_v58 = vpop.xlane.xlu0 %591 }
 0x692   : > { %1533 = vrcp.f32 %v592_v58 }
 0x69c   : > { %v1534_v59 = vpop.eup %1533 }
 0x6d8   : > { %v636_v60 = vpop.f32.mrb[12].mxu0 }
 0x6d9   : > { %v643_v61 = vmul.f32 %v1534_v59, %v636_v60  ;;  %v1369_v62 = vpop.f32.mrb[13].mxu0 }
 0x6da   : > { %v639_v63 = vpop.f32.mrb[14].mxu0  ;;  %v1256_v62 = vld [vmem:[%s2071_s3] ss:$0 sm:$0xff] }
 0x6db   : > { %v644_v1 = vpack.c.bf16 %v643_v61, %v643_v61  ;;  %v1370_v2 = vpop.f32.mrb[15].mxu0 }
 0x6dd   : > { %1374 = vmatmul.mubr.msk.bf16.vlgmr.msra.gmra.mrb[4].mxu1 %vm315_vm3, %v644_v1 }
 0x6de   : > { %1387 = vmatprep.mubr.msk.bf16.mxu1 %vm1707_vm0, %v1706_v0 }
 0x6e0   : > { %v749_v4 = vpop.f32.mrb[16].mxu0 }
 0x6e1   : > { %v755_v5 = vpack.c.bf16 %v749_v4, %v749_v4  ;;  %v1383_v6 = vpop.f32.mrb[17].mxu0 }
 0x6e2   : > { %v752_v7 = vpop.f32.mrb[18].mxu0 }
 0x6e3   : > { %815 = vrot.lane.b32.xlu0 %v755_v5, %s1708_s21  ;;  %757 = vrot.lane.b32.xlu1 %v755_v5, %s1709_s23  ;;  %v1384_v8 = vpop.f32.mrb[19].mxu0 }
 0x755   : > { %v816_v9 = vpop.permute.xlu0 %815  ;;  %v758_v10 = vpop.permute.xlu1 %757 }
 0x756   : > { %v821_v11 = vsel %vm378_vm2, %v816_v9, 0  ;;  %v763_v12 = vsel %vm315_vm3, %v758_v10, 0 }
 0x757   : > { %1386 = vmatpush3.bf16.xpose.msra.mxu1 %v763_v12  ;;  %1392 = vmatpush3.bf16.msra.mxu0 %v821_v11 }
 0x758   : > { %1403 = vmatprep.subr.bf16.mxu0 %v1706_v0  ;;  %1397 = vmatprep.subr.bf16.mxu1 %v1706_v0 }
 0x75e   : > { %1388 = vmatmul.mubr.msk.bf16.vlgmr.msra.gmra.mrb[12].mxu1 %vm315_vm3, %v755_v5 }
 0x75f   : > { %1399 = vmatprep.mubr.msk.bf16.mxu1 %vm1707_vm0, %v1706_v0  ;;  %1398 = vmatpush3.bf16.msra.mxu1 %v1525_v26 }
 0x760   : > { %1411 = vmatprep.subr.bf16.mxu1 %v1706_v0 }
 0x831   : > { %v799_v13 = vpop.f32.mrb[12].mxu1 }
 0x832   : > { %v1389_v14 = vpop.f32.mrb[13].mxu1  ;;  %v805_v15 = vsel %vm362_vm4, %v799_v13, -inf }
 0x833   : > { %806 = vmax.xlane.f32.xlu1 %v805_v15  ;;  %v802_v16 = vpop.f32.mrb[14].mxu1 }
 0x834   : > { %v1390_v17 = vpop.f32.mrb[15].mxu1 }
 0x8c0   : > { %v807_v18 = vpop.xlane.xlu1 %806 }
 0x8c1   : > { %v808_v19 = vsub.f32 %v799_v13, %v807_v18 }
 0x8c3   : > { %v809_v20 = vmul.f32 1.442695, %v808_v19 }
 0x8c5   : > { %1535 = vpow2.f32 %v809_v20 }
 0x8cf   : > { %v1536_v21 = vpop.eup %1535 }
 0x8d0   : > { %v811_v23 = vsel %vm362_vm4, %v1536_v21, 0.0  ;;  %v814_v24 = vpack.c.bf16 %v1536_v21, %v1536_v21 }
 0x8d1   : > { %812 = vadd.xlane.f32.xlu1 %v811_v23 }
 0x8d2   : > { %1394 = vmatmul.mubr.msk.bf16.vlgmr.msra.gmra.mrb[20].mxu0 %vm362_vm4, %v814_v24 }
 0x8d3   : > { %1404 = vmatpush3.bf16.msra.mxu0 %v1523_v22  ;;  %1407 = vmatprep.mubr.msk.bf16.mxu0 %vm1707_vm0, %v1706_v0 }
 0x8d4   : > { %1405 = vmatprep.subr.bf16.mxu0 %v1706_v0 }
 0x8d7   : > { %1406 = vmatpush3.bf16.msra.mxu0 %v1524_v25 }
 0x8d8   : > { %1417 = vmatprep.subr.bf16.mxu0 %v1706_v0 }
 0x8da   : > { %1408 = vmatmul.mubr.msk.bf16.vlgmr.msra.gmra.mrb[24].mxu0 %vm267_vm1, %v1924_v3 }
 0x8db   : > { %1419 = vmatprep.mubr.msk.bf16.mxu0 %vm1707_vm0, %v1706_v0 }
 0x95e   : > { %v813_v27 = vpop.xlane.xlu1 %812 }
 0x95f   : > { %1537 = vrcp.f32 %v813_v27 }
 0x969   : > { %v1538_v28 = vpop.eup %1537 }
 0x9a5   : > { %v857_v29 = vpop.f32.mrb[20].mxu0 }
 0x9a6   : > { %v864_v30 = vmul.f32 %v1538_v28, %v857_v29  ;;  %v1395_v31 = vpop.f32.mrb[21].mxu0 }
 0x9a7   : > { %v860_v32 = vpop.f32.mrb[22].mxu0 }
 0x9a8   : > { %v865_v33 = vpack.c.bf16 %v864_v30, %v864_v30  ;;  %v1396_v34 = vpop.f32.mrb[23].mxu0 }
 0x9aa   : > { %1400 = vmatmul.mubr.msk.bf16.vlgmr.msra.gmra.mrb[4].mxu1 %vm315_vm3, %v865_v33 }
 0x9ab   : > { %1413 = vmatprep.mubr.msk.bf16.mxu1 %vm1707_vm0, %v1706_v0 }
 0x9ad   : > { %v970_v3 = vpop.f32.mrb[24].mxu0 }
 0x9ae   : > { %v976_v35 = vpack.c.bf16 %v970_v3, %v970_v3  ;;  %v1409_v36 = vpop.f32.mrb[25].mxu0 }
 0x9af   : > { %v973_v37 = vpop.f32.mrb[26].mxu0 }
 0x9b0   : > { %978 = vrot.lane.b32.xlu1 %v976_v35, %s1709_s23  ;;  %v1410_v38 = vpop.f32.mrb[27].mxu0 }
 0x9b4   : > { %1036 = vrot.lane.b32.xlu1 %v976_v35, %s1708_s21 }
 0xa22   : > { %v979_v39 = vpop.permute.xlu1 %978 }
 0xa23   : > { %v984_v40 = vsel %vm315_vm3, %v979_v39, 0 }
 0xa24   : > { %1412 = vmatpush3.bf16.xpose.msra.mxu1 %v984_v40 }
 0xa25   : > { %1423 = vmatprep.subr.bf16.mxu1 %v1706_v0 }
 0xa26   : > { %v1037_v41 = vpop.permute.xlu1 %1036 }
 0xa27   : > { %v1042_v42 = vsel %vm378_vm2, %v1037_v41, 0 }
 0xa28   : > { %1418 = vmatpush3.bf16.msra.mxu0 %v1042_v42 }
 0xa2b   : > { %1414 = vmatmul.mubr.msk.bf16.vlgmr.msra.gmra.mrb[16].mxu1 %vm315_vm3, %v976_v35 }
 0xa2c   : > { %1425 = vmatprep.mubr.msk.bf16.mxu1 %vm1707_vm0, %v1706_v0  ;;  %v1526_v0 = vld [vmem:[#allocation7 + $0x18] sm:$0xff]  }
 0xa2d   : > { %1424 = vmatpush3.bf16.msra.mxu1 %v1526_v0 }
 0xafe   : > { %v1020_v43 = vpop.f32.mrb[16].mxu1 }
 0xaff   : > { %v1415_v44 = vpop.f32.mrb[17].mxu1  ;;  %v1026_v45 = vsel %vm362_vm4, %v1020_v43, -inf }
 0xb00   : > { %1027 = vmax.xlane.f32.xlu0 %v1026_v45  ;;  %v1023_v46 = vpop.f32.mrb[18].mxu1 }
 0xb01   : > { %v1416_v47 = vpop.f32.mrb[19].mxu1 }
 0xb8d   : > { %v1028_v48 = vpop.xlane.xlu0 %1027 }
 0xb8e   : > { %v1029_v49 = vsub.f32 %v1020_v43, %v1028_v48 }
 0xb90   : > { %v1030_v50 = vmul.f32 1.442695, %v1029_v49 }
 0xb92   : > { %1539 = vpow2.f32 %v1030_v50 }
 0xb9c   : > { %v1540_v51 = vpop.eup %1539 }
 0xb9d   : > { %v1032_v52 = vsel %vm362_vm4, %v1540_v51, 0.0  ;;  %v1035_v53 = vpack.c.bf16 %v1540_v51, %v1540_v51 }
 0xb9e   : > { %1033 = vadd.xlane.f32.xlu1 %v1032_v52 }
 0xb9f   : > { %1420 = vmatmul.mubr.msk.bf16.vlgmr.msra.gmra.mrb[28].mxu0 %vm362_vm4, %v1035_v53 }
 0xc2b   : > { %v1034_v54 = vpop.xlane.xlu1 %1033 }
 0xc2c   : > { %1541 = vrcp.f32 %v1034_v54 }
 0xc36   : > { %v1542_v55 = vpop.eup %1541 }
 0xc72   : > { %v1078_v56 = vpop.f32.mrb[28].mxu0 }
 0xc73   : > { %v1085_v57 = vmul.f32 %v1542_v55, %v1078_v56  ;;  %v1421_v58 = vpop.f32.mrb[29].mxu0 }
 0xc74   : > { %v1081_v59 = vpop.f32.mrb[30].mxu0 }
 0xc75   : > { %v1086_v60 = vpack.c.bf16 %v1085_v57, %v1085_v57  ;;  %v1422_v61 = vpop.f32.mrb[31].mxu0 }
 0xc77   : > { %1426 = vmatmul.mubr.msk.bf16.vlgmr.msra.gmra.mrb[4].mxu1 %vm315_vm3, %v1086_v60 }
 0xd4a   : > { %v1133_v63 = vpop.f32.mrb[4].mxu1 }
 0xd4b   : > { %v1429_v1 = vadd.f32 %v1256_v62, %v1133_v63  ;;  %v1427_v2 = vpop.f32.mrb[5].mxu1 }
 0xd4c   : > { %v1136_v4 = vpop.f32.mrb[6].mxu1 }
 0xd4d   : > { %v1428_v5 = vpop.f32.mrb[7].mxu1  ;;  %1140 = vst.msk [vmem:[%s241_s26] sm:$0xff] %vm267_vm1, %v1429_v1 }
 0xd4e   : > { %1642 = shalt.err (!%p1639_p2)
}
 0xd4f   : > { %s1643_s29 = scalar_lea.hbm %s2023_s28, 128  ;;  %s1647_s23 = scalar_lea.hbm %s2072_s4, 256 }
 0xd50   : > { %p1644_p13 = scmp.ne.s32.totalorder %s2023_s28, %s1643_s29  ;;  %p1648_p4 = scmp.lt.u32.totalorder %s2023_s28, %s2072_s4 }
 0xd51   : > { %p1649_p5 = scmp.lt.u32.totalorder %s1647_s23, %s1643_s29  ;;  %p1651_p8 = scmp.lt.u32.totalorder %s1643_s29, %s2023_s28 }
 0xd52   : > { %p1645_p6 = pnand %p1644_p13, %p2086_p0 }
 0xd53   : > { %p1650_p11 = por %p1649_p5, %p1648_p4 }
 0xd54   : > { %p1646_p10 = pneg %p1645_p6 }
 0xd55   : > { %p1652_p1 = por %p1651_p8, %p1650_p11 }
 0xd57   : > { %p1653_p3 = pnand %p1652_p1, %p1646_p10 }
 0xd59   : > { %1656 = shalt.err (!%p1653_p3)
}
 0xd5a   : > { %1452 = dma.vmem_to_hbm [thread:$0]  (%p2086_p0), %s2025_s10, 128, %s2023_s28, %s1142_s19  }
 0xd5b PF: > { %s1167_s5 = sand.u32 1, %s1687_s15   ;;  %p2087_p7 = scmp.ne.s32.totalorder %s2077_s22, 0 }
 0xd5c   : > { %p2088_p9 = scmp.ge.s32.totalorder %s1699_s18, 2  ;;  %s1168_s6 = scalar_lea.sflag [#allocation4], %s1167_s5 }
 0xd5e   : > { %p1466_p12 = pnand %p2088_p9, %p2087_p7 }
 0xd60   : > { %1682 = dma.done.wait (!%p1466_p12), %s1168_s6, 128  }
 0xd61   : > { %1684 = vsyncadd (!%p1466_p12), %s1168_s6, 4294967168  ;;  %p18_p2 = scmp.ge.s32.totalorder %s1846_s9, 4   ;;  %s2089_s15 = smov %s1691_s16 }
 0xd62   : > { %s2090_s16 = smov %s1695_s17  ;;  %s2091_s17 = smov %s1862_s14 }
 0xd63   : > { %s2092_s18 = smov %s1846_s9  ;;  %20 = sbr.rel (!%p18_p2) target bundleno = 6 (0x6), region = 95 }
 0xd6a   :  { %1173 = vsyncpa [#allocation3], 1 }
 0xd6b   :  { %1175 = vsyncpa [#allocation3 + $0x1], 1 }
 0xd6c   :  { %1176 = vsyncpa [#allocation6], 1 }
 0xd6d   :  { %1177 = vsyncpa [#allocation4], 1 }
 0xd6e   :  { %1179 = vsyncpa [#allocation4 + $0x1], 1 }

</bundles_post_ra>
